<compile_context>
chip_gen: v6e
topology: v6e:2x2x1
jax: 0.10.0
libtpu: 0.0.40
codegen_flags: <defaults>
</compile_context>

<pallas_src>
import jax
import jax.numpy as jnp
from jax import lax
from jax.experimental import pallas as pl
from jax.experimental.pallas import tpu as pltpu

BN_EPS = 1e-5  # PyTorch BatchNorm2d default


def _gram_kernel(a_ref, g_ref):
    """Phase A: accumulate the augmented Gram matrix G += A_tile @ A_tile^T."""
    @pl.when(pl.program_id(1) == 0)
    def _init():
        g_ref[...] = jnp.zeros_like(g_ref)

    a = a_ref[...]                                        # (KP, TM) bf16
    g = lax.dot_general(a, a,
                        dimension_numbers=(((1,), (1,)), ((), ())),
                        preferred_element_type=jnp.float32)   # (KP, KP) f32
    g_ref[...] += g[None, :, :]


def _conv_out_kernel(a_ref, w_ref, o_ref):
    """Phase B: out_tile = W_eff_aug^T (f32, BN+mask+arch+bias folded) @ A_tile."""
    av = a_ref[...].astype(jnp.float32)                   # (KP, TM)
    o_ref[...] = jnp.dot(w_ref[...], av,
                         preferred_element_type=jnp.float32).astype(o_ref.dtype)


def sample_sep_mask_conv_bn(x_nchw, conv_weights, arch_weight, channel_setting,
                            stride=1, padding=1, tile_m=2048):
    """Forward of SampleSepMaskConvBN (lenth=None path).

    x_nchw:          [N, Cin, H, W]          (NCHW, like PyTorch)
    conv_weights:    [B, Cout, Cin, KH, KW]  one OIHW weight per candidate width
    arch_weight:     [B]                     architecture weights
    channel_setting: SuperNetSetting[layer_id] (list of B candidate widths)
    """
    N, Cin, H, W = x_nchw.shape
    B, Cout, _, KH, KW = conv_weights.shape
    assert B == len(channel_setting) and Cout == channel_setting[-1]
    Ho = (H + 2 * padding - KH) // stride + 1
    Wo = (W + 2 * padding - KW) // stride + 1
    M = N * Ho * Wo
    K = KH * KW * Cin
    KA = K + 1                       # + ones row (carries the folded BN bias)
    KP = -(-KA // 8) * 8             # pad rows to a sublane multiple

    # ---- tiling: TM multiple of 128 (lane-dense stores).  Expose >=2 grid
    # steps whenever M allows so v7x's 2 TensorCores both get work; big tiles
    # (default 2048) amortize the ~0.35us per-step overhead at production M.
    half = 128 * max(1, -(-M // (2 * 128)))          # ~ceil(M/2) rounded to 128
    TM = max(128, min((tile_m // 128) * 128, half))
    n_tiles = -(-M // TM)
    n_core = 2 if n_tiles >= 2 else 1
    tiles_per_core = -(-n_tiles // n_core)
    n_tiles = n_core * tiles_per_core
    M_pad = n_tiles * TM

    # ---- im2col glue (XLA): cast to bf16 BEFORE the KH*KW blow-up, build the
    # slab directly in (K, M) layout so M is the lane axis of every tile.
    # TODO(synk): at production scale replace this 9x materialization with
    # tap-offset BlockSpecs into the padded NHWC activation (halo reads only).
    xb = jnp.transpose(x_nchw.astype(jnp.bfloat16), (1, 0, 2, 3))  # (Cin,N,H,W)
    xp = jnp.pad(xb, ((0, 0), (0, 0), (padding, padding), (padding, padding)))
    taps = []
    for dh in range(KH):
        for dw in range(KW):
            taps.append(xp[:, :, dh:dh + stride * Ho:stride,
                           dw:dw + stride * Wo:stride])     # (Cin, N, Ho, Wo)
    a = jnp.stack(taps, axis=0).reshape(K, M)      # K-order (kh, kw, cin)
    # Zero-padded columns contribute 0 to the Gram sums (we divide by true M)
    # and produce 0 output rows (the ones row is 0 there); sliced away below.
    a = jnp.pad(a, ((0, 0), (0, M_pad - M)))
    ones_row = (jnp.arange(M_pad) < M).astype(jnp.bfloat16)[None, :]
    a_aug = jnp.concatenate(
        [a, ones_row, jnp.zeros((KP - KA, M_pad), jnp.bfloat16)], axis=0)

    vmem_limit = 32 * 1024 * 1024    # plenty for TM up to ~16K on v5e/v6e/v7x

    # ---- phase A: per-TensorCore partial Gram matrices ----
    gram = pl.pallas_call(
        _gram_kernel,
        out_shape=jax.ShapeDtypeStruct((n_core, KP, KP), jnp.float32),
        grid_spec=pltpu.PrefetchScalarGridSpec(
            num_scalar_prefetch=0,
            grid=(n_core, tiles_per_core),
            in_specs=[pl.BlockSpec(
                (KP, TM), lambda c, t: (0, c * tiles_per_core + t))],
            out_specs=pl.BlockSpec((1, KP, KP), lambda c, t: (c, 0, 0))),
        compiler_params=pltpu.CompilerParams(
            dimension_semantics=("parallel", "arbitrary"),
            vmem_limit_bytes=vmem_limit),
        cost_estimate=pl.CostEstimate(
            flops=2 * KP * KP * M_pad,
            transcendentals=0,
            bytes_accessed=M_pad * KP * 2 + n_core * KP * KP * 4),
    )(a_aug)

    # ---- wrapper: derive BN stats per branch and fold everything into one
    # effective weight (all tiny [K x B*Cout]-sized f32 XLA ops).
    g = jnp.sum(gram, axis=0)                    # (KP, KP)
    G = g[:K, :K]                                # sum_m a a^T
    s = g[K, :K]                                 # sum_m a   (row K = ones row)
    inv_m = 1.0 / float(M)

    w_kbc = jnp.stack(
        [jnp.transpose(conv_weights[b], (2, 3, 1, 0)).reshape(K, Cout)
         for b in range(B)], axis=1).astype(jnp.float32)      # (K, B, Cout)
    w_flat = w_kbc.reshape(K, B * Cout)

    mean = (w_flat.T @ s) * inv_m                              # (B*Cout,)
    e2 = jnp.einsum('kc,kc->c', w_flat, G @ w_flat) * inv_m    # E[conv^2]
    var = jnp.maximum(e2 - mean * mean, 0.0)                   # clamp (one-pass)

    chan = jnp.arange(Cout)
    branch_mask = (chan[None, :] <
                   jnp.asarray(channel_setting)[:, None]).astype(jnp.float32)
    scale = (arch_weight.astype(jnp.float32)[:, None] * branch_mask
             * lax.rsqrt(var.reshape(B, Cout) + BN_EPS))       # (B, Cout)
    w_eff = jnp.einsum('kbc,bc->kc', w_kbc, scale)             # (K, Cout)
    b_eff = -jnp.sum(scale * mean.reshape(B, Cout), axis=0)    # (Cout,)
    w_aug_t = jnp.transpose(jnp.concatenate(
        [w_eff, b_eff[None, :], jnp.zeros((KP - KA, Cout), jnp.float32)],
        axis=0))                                               # (Cout, KP) f32

    # ---- phase B: one small matmul per tile, lane-dense (Cout, TM) stores ----
    out_cm = pl.pallas_call(
        _conv_out_kernel,
        out_shape=jax.ShapeDtypeStruct((Cout, M_pad), jnp.float32),
        grid_spec=pltpu.PrefetchScalarGridSpec(
            num_scalar_prefetch=0,
            grid=(n_tiles,),
            in_specs=[pl.BlockSpec((KP, TM), lambda i: (0, i)),
                      pl.BlockSpec((Cout, KP), lambda i: (0, 0))],
            out_specs=pl.BlockSpec((Cout, TM), lambda i: (0, i))),
        compiler_params=pltpu.CompilerParams(
            dimension_semantics=("parallel",),
            vmem_limit_bytes=vmem_limit),
        cost_estimate=pl.CostEstimate(
            flops=2 * Cout * KP * M_pad,
            transcendentals=0,
            bytes_accessed=(M_pad * KP * 2 + Cout * KP * 4 + Cout * M_pad * 4)),
    )(a_aug, w_aug_t)

    out = out_cm[:, :M].reshape(Cout, N, Ho, Wo)
    return jnp.transpose(out, (1, 0, 2, 3)).astype(x_nchw.dtype)   # NCHW


def _reference(x_nchw, conv_weights, arch_weight, channel_setting,
               stride=1, padding=1):
    """Plain-JAX float32 mirror of the PyTorch forward (per-branch conv + BN)."""
    Cout = conv_weights.shape[1]
    chan = jnp.arange(Cout)
    out = 0.0
    for i, c in enumerate(channel_setting):
        y = lax.conv_general_dilated(
            x_nchw, conv_weights[i], window_strides=(stride, stride),
            padding=((padding, padding), (padding, padding)),
            dimension_numbers=('NCHW', 'OIHW', 'NCHW'))
        mean = jnp.mean(y, axis=(0, 2, 3), keepdims=True)
        var = jnp.mean(jnp.square(y - mean), axis=(0, 2, 3), keepdims=True)
        y = (y - mean) / jnp.sqrt(var + BN_EPS)
        mask = (chan < c).astype(jnp.float32)[None, :, None, None]
        out = out + arch_weight[i] * mask * y
    return out


if __name__ == "__main__":
    key = jax.random.PRNGKey(0)
    k1, k2, k3 = jax.random.split(key, 3)

    # layer_id = 0: SuperNetSetting[0] = [4, 8, 12, 16] -> out_planes = 16
    channel_setting = [4, 8, 12, 16]
    B = len(channel_setting)
    N, Cin, H, W = 2, 4, 16, 16
    Cout = channel_setting[-1]
    KH = KW = 3

    x = jax.random.normal(k1, (N, Cin, H, W), jnp.float32)
    fan_in = Cin * KH * KW
    conv_w = jax.random.normal(k2, (B, Cout, Cin, KH, KW),
                               jnp.float32) / jnp.sqrt(fan_in)
    arch_w = jax.nn.softmax(jax.random.normal(k3, (B,), jnp.float32))

    # tile_m=128 exercises a real multi-tile grid (M = 2*16*16 = 512 -> 4 tiles,
    # 2 "cores" x 2 accumulation steps in phase A).
    out = sample_sep_mask_conv_bn(x, conv_w, arch_w, channel_setting,
                                  stride=1, padding=1, tile_m=128)
    out = jax.block_until_ready(out)
    assert out.shape == (N, Cout, H, W), out.shape
    assert bool(jnp.all(jnp.isfinite(out)))

    # Default (production-style) tiling: TM=256 -> 2 parallel steps.
    out2 = jax.block_until_ready(
        sample_sep_mask_conv_bn(x, conv_w, arch_w, channel_setting))
    assert out2.shape == out.shape

    # Tight check: reference fed the same bf16-rounded activations the kernel
    # streams (conv weights stay f32 since W_eff is folded/streamed in f32).
    x_q = x.astype(jnp.bfloat16).astype(jnp.float32)
    ref_q = _reference(x_q, conv_w, arch_w, channel_setting, 1, 1)
    err_q = float(jnp.max(jnp.abs(out - ref_q)))
    assert jnp.allclose(out, ref_q, atol=1e-2, rtol=1e-2), err_q
    err_q2 = float(jnp.max(jnp.abs(out2 - ref_q)))
    assert jnp.allclose(out2, ref_q, atol=1e-2, rtol=1e-2), err_q2

    # Loose check: full-f32 PyTorch-faithful reference (difference is only the
    # bf16 streaming of activations into the kernels).
    ref = _reference(x, conv_w, arch_w, channel_setting, 1, 1)
    err = float(jnp.max(jnp.abs(out - ref)))
    assert jnp.allclose(out, ref, atol=5e-2, rtol=5e-2), err

    # TODO(synk): the PyTorch loop skips branches whose arch weight == 0 (and
    # returns python int 0 if every weight is 0); the fused weighted-mask fold
    # here computes all branches unconditionally, which is numerically identical.
    print("KERNEL_OK")
</pallas_src>

<mosaic_0001>
module attributes {stable_mosaic.version = 11 : i64} {
  func.func @_gram_kernel(%arg0: i32, %arg1: i32, %arg2: memref<40x128xbf16, #tpu.memory_space<vmem>>, %arg3: memref<1x40x40xf32, #tpu.memory_space<vmem>>) attributes {dimension_semantics = [#tpu.dimension_semantics<parallel>, #tpu.dimension_semantics<arbitrary>], iteration_bounds = array<i64: 2, 2>, scalar_prefetch = 0 : i64, scratch_operands = 0 : i64, tpu.core_type = #tpu.core_type<tc>, window_params = [{transform_indices = @transform_0, window_bounds = array<i64: 40, 128>}, {transform_indices = @transform_1, window_bounds = array<i64: 1, 40, 40>}]} {
    %c0_i32 = arith.constant 0 : i32
    %0 = arith.cmpi eq, %arg1, %c0_i32 : i32
    %1 = arith.extui %0 : i1 to i32
    %c0_i32_0 = arith.constant 0 : i32
    %2 = arith.cmpi ne, %1, %c0_i32_0 : i32
    scf.if %2 {
      %cst_8 = arith.constant 0.000000e+00 : f32
      %9 = vector.broadcast %cst_8 : f32 to vector<1x40x40xf32>
      %c0_9 = arith.constant 0 : index
      %c0_10 = arith.constant 0 : index
      %c0_11 = arith.constant 0 : index
      %10 = vector.load %arg3[%c0_9, %c0_10, %c0_11] : memref<1x40x40xf32, #tpu.memory_space<vmem>>, vector<1x40x40xf32>
      tpu.vector_store %arg3[%c0_9, %c0_10, %c0_11], %9 {strides = array<i32>} : memref<1x40x40xf32, #tpu.memory_space<vmem>>, vector<1x40x40xf32>,
    } else {
    }
    %c0 = arith.constant 0 : index
    %c0_1 = arith.constant 0 : index
    %3 = vector.load %arg2[%c0, %c0_1] : memref<40x128xbf16, #tpu.memory_space<vmem>>, vector<40x128xbf16>
    %cst = arith.constant dense<0.000000e+00> : vector<40x40xf32>
    %4 = tpu.matmul %3, %3, %cst {dimension_numbers = #tpu.dot_dimension_numbers<[1], [1], [0], [0], [0, 0, 1, 0], [], []>} : vector<40x128xbf16>, vector<40x128xbf16>, vector<40x40xf32> -> vector<40x40xf32>
    %c0_2 = arith.constant 0 : index
    %c0_3 = arith.constant 0 : index
    %c0_4 = arith.constant 0 : index
    %5 = vector.load %arg3[%c0_2, %c0_3, %c0_4] : memref<1x40x40xf32, #tpu.memory_space<vmem>>, vector<1x40x40xf32>
    %6 = vector.shape_cast %4 : vector<40x40xf32> to vector<1x40x40xf32>
    %7 = arith.addf %5, %6 : vector<1x40x40xf32>
    %c0_5 = arith.constant 0 : index
    %c0_6 = arith.constant 0 : index
    %c0_7 = arith.constant 0 : index
    %8 = vector.load %arg3[%c0_5, %c0_6, %c0_7] : memref<1x40x40xf32, #tpu.memory_space<vmem>>, vector<1x40x40xf32>
    tpu.vector_store %arg3[%c0_5, %c0_6, %c0_7], %7 {strides = array<i32>} : memref<1x40x40xf32, #tpu.memory_space<vmem>>, vector<1x40x40xf32>,
    return
  }
  func.func @transform_0(%arg0: i32, %arg1: i32) -> (i32, i32) {
    %c2_i32 = arith.constant 2 : i32
    %0 = arith.muli %arg0, %c2_i32 : i32
    %1 = arith.addi %0, %arg1 : i32
    %c0_i32 = arith.constant 0 : i32
    %c0_i32_0 = arith.constant 0 : i32
    return %c0_i32, %1 : i32, i32
  }
  func.func @transform_1(%arg0: i32, %arg1: i32) -> (i32, i32, i32) {
    %c0_i32 = arith.constant 0 : i32
    %c0_i32_0 = arith.constant 0 : i32
    %c0_i32_1 = arith.constant 0 : i32
    return %arg0, %c0_i32, %c0_i32_0 : i32, i32, i32
  }
}

</mosaic_0001>

<bundles_post_ra>
// kernel: tpu_custom_call.1
= control target key start
LH: loop header
LB: loop body
LE: loop exit
PB: predicated region body
PF: predicated region fallthrough
CT: control target
= control target key end

     0   :  { %6 = vsyncpa [#allocation3], 0  ;;  %s923_s0 = inlined_call_operand.hbm [shape: bf16[40,512], index: 0, kind: input, shape index: {}]   ;;  %s924_s1 = inlined_call_operand.hbm [shape: f32[2,40,40], index: 1, kind: output, shape index: {}]  }
   0x1   :  { %8 = vsyncpa [#allocation3 + $0x1], 0 }
   0x2   :  { %9 = vsyncpa [#allocation4], 0 }
   0x3   :  { %11 = vsyncpa [#allocation4 + $0x1], 0  ;;  %s691_s6 = smov 0   ;;  %s693_s7 = smov 0  }
   0x4   :  { %s695_s8 = smov 0   ;;  %s697_s9 = smov 0  }
   0x5   :  { %s699_s10 = smov 0   ;;  %s701_s11 = smov 0  }
   0x6   :  { %s703_s12 = smov 0   ;;  %s705_s13 = smov 0  }
   0x7   :  { %s707_s14 = smov 0   ;;  %s709_s15 = smov 0  }
   0x8   :  { %s711_s16 = smov 0  }
   0x9 LB: > { %s358_s17 = sadd.s32 4294967295, %s669_s16   ;;  %s359_s18 = sadd.s32 4294967294, %s669_s16   ;;  %s669_s16 = sphi %s711_s16, %s17_s16   ;;  %s665_s15 = sphi %s709_s15, %s942_s15   ;;  %s661_s14 = sphi %s707_s14, %s941_s14   ;;  %s657_s13 = sphi %s705_s13, %s940_s13   ;;  %s653_s12 = sphi %s703_s12, %s939_s12   ;;  %s649_s11 = sphi %s701_s11, %s938_s11   ;;  %s645_s10 = sphi %s699_s10, %s937_s10   ;;  %s641_s9 = sphi %s697_s9, %s936_s9   ;;  %s637_s8 = sphi %s695_s8, %s935_s8   ;;  %s633_s7 = sphi %s693_s7, %s934_s7   ;;  %s629_s6 = sphi %s691_s6, %s933_s6  }
   0xa   : > { %s26_s19 = sadd.s32 1, %s661_s14  ;;  %s29_s20 = sadd.s32 1, %s665_s15 }
   0xb   : > { %p27_p0 = scmp.ge.s32.totalorder %s26_s19, 2  ;;  %s360_s21 = sshll.u32 %s665_s15, 1 }
   0xc   : > { %s750_s22 = sadd.s32 %s661_s14, %s360_s21  ;;  %s40_s23 = sadd.s32 1, %s649_s11 }
   0xd   : > { %s944_s19 = smov (%p27_p0, %s26_s19), 0  ;;  %s946_s20 = smov (!%p27_p0, %s29_s20), %s665_s15 }
   0xe   : > { %p47_p1 = scmp.ne.s32.totalorder %s649_s11, %s645_s10  ;;  %p48_p2 = scmp.eq.s32.totalorder %s669_s16, 0 }
   0xf   : > { %p31_p3 = scmp.ge.s32.totalorder %s946_s20, 2  ;;  %p53_p4 = scmp.ne.s32.totalorder %s645_s10, %s641_s9 }
  0x10   : > { %p760_p5 = por %p48_p2, %p47_p1  ;;  %p54_p6 = scmp.eq.s32.totalorder %s358_s17, 0 }
  0x11   : > { %s948_s20 = smov (%p31_p3, %s946_s20), 0  ;;  %s66_s26 = sadd.s32 1, %s637_s8 }
  0x12   : > { %927 = sst [smem:[#allocation8_spill]] %s948_s20  ;;  %p766_p7 = por %p54_p6, %p53_p4 }
  0x13   : > { %s361_s27 = sshll.u32 %s948_s20, 1  ;;  %s63_s28 = ssub.s32 %s665_s15, %s948_s20 }
  0x14   : > { %s36_s29 = sadd.s32 %s361_s27, %s944_s19  ;;  %p64_p8 = scmp.eq.s32.totalorder %s63_s28, 0 }
  0x15   : > { %s37_s30 = ssub.s32 %s750_s22, %s36_s29  ;;  %p76_p9 = scmp.ne.s32.totalorder %s637_s8, %s633_s7 }
  0x16   : > { %p38_p10 = scmp.eq.s32.totalorder %s37_s30, 0  ;;  %p77_p11 = scmp.eq.s32.totalorder %s358_s17, 3 }
  0x17   : > { %s779_s2 = scalar_select %p64_p8, %s637_s8, %s66_s26  }
  0x18   : > { %s782_s3 = scalar_select %p38_p10, %s649_s11, %s40_s23  }
  0x19   : > { %p784_p12 = por %p77_p11, %p76_p9  ;;  %p82_p13 = scmp.ne.s32.totalorder %s633_s7, %s629_s6 }
  0x1a   : > { %p83_p0 = scmp.eq.s32.totalorder %s359_s18, 3  ;;  %p420_p1 = scmp.lt.s32.totalorder %s669_s16, 4 }
  0x1b   : > { %s103_s5 = sand.u32 1, %s649_s11   ;;  %s365_s17 = sshll.u32 %s750_s22, 6 }
  0x1c   : > { %p794_p2 = por %p83_p0, %p82_p13  ;;  %s404_s21 = smul.u32 20, %s103_s5 }
  0x1d   : > { %s114_s23 = scalar_lea.hbm %s923_s0, %s365_s17  ;;  %p804_p3 = pnand %p420_p1, %p760_p5 }
  0x1e   : > { %s107_s29 = scalar_lea.vmem [#allocation2], %s404_s21  ;;  %p366_p4 = scmp.ge.s32.totalorder %s669_s16, 1 }
  0x1f   : > { %s115_s18 = sshll.u32 %s107_s29, 4  ;;  %s104_s30 = scalar_lea.sflag [#allocation3], %s103_s5  ;;  %s116_s18 = int_to_ptr.vmem [resolvable:$true] %s115_s18 }
  0x20   : > { %p523_p6 = pneg %p804_p3  ;;  %s534_s20 = scalar_lea.vmem %s116_s18, 320 }
  0x21   : > { %p535_p8 = scmp.ne.s32.totalorder %s116_s18, %s534_s20  ;;  %s671_s22 = smov [#allocation2]  }
  0x22   : > { %s539_s27 = sshll.u32 %s671_s22, 4  ;;  %s540_s27 = int_to_ptr.vmem [resolvable:$false] %s539_s27 }
  0x23   : > { %p537_p9 = pnand %p535_p8, %p523_p6  ;;  %s541_s24 = scalar_lea.vmem %s540_s27, 640 }
  0x24   : > { %p542_p5 = scmp.lt.s32.totalorder %s116_s18, %s540_s27  ;;  %p543_p11 = scmp.lt.s32.totalorder %s541_s24, %s534_s20 }
  0x25   : > { %p538_p10 = pneg %p537_p9 }
  0x26   : > { %p544_p13 = por %p543_p11, %p542_p5 }
  0x28   : > { %p545_p0 = pnand %p544_p13, %p538_p10 }
  0x2a   : > { %548 = shalt.err (!%p545_p0)
}
  0x2b   : > { %s672_s21 = smov 256   ;;  %s673_s5 = smov 64  }
  0x2c   : > { %s674_s17 = smov 4   ;;  %p123_p1 = scmp.lt.s32.totalorder %s669_s16, 5 }
  0x2d   : > { %415 = dma.hbm_to_vmem [thread:$0]  (!%p804_p3), %s114_s23, 320, %s116_s18, %s104_s30, %s672_s21, %s673_s5, %s674_s17  }
  0x2e   : > { %p124_p6 = pnand %p366_p4, %p123_p1 }
  0x2f   : > { %s129_s26 = sand.u32 (!%p124_p6), 1, %s645_s10  }
  0x30   : > { %127 = sbr.rel (%p124_p6) target bundleno = 308 (0x134), region = 24  ;;  %s130_s20 = scalar_lea.sflag (!%p124_p6), [#allocation3], %s129_s26 }
  0x31   : > { %s405_s29 = smul.u32 (!%p124_p6), 20, %s129_s26 }
  0x33   : > { %s817_s22 = scalar_lea.vmem (!%p124_p6), [#allocation2], %s405_s29 }
  0x35   : > { %620 = dma.done.wait (%p766_p7), %s130_s20, 320  }
  0x36   : > { %622 = vsyncadd (%p766_p7), %s130_s20, 4294966976  ;;  %s149_s28 = sand.u32 1, %s633_s7   ;;  %p367_p3 = scmp.ne.s32.totalorder %s653_s12, 0 }
  0x37   : > { %s406_s23 = smul.u32 40, %s149_s28 }
  0x38   : > { %158 = sbr.rel (%p367_p3) target bundleno = 65 (0x41), region = 32 }
  0x39   : > { %s826_s18 = scalar_lea.vmem [#allocation5], %s406_s23 }
  0x3d   : > { %vm159_vm0 = vcmask 326656   ;;  %v675_v0 = vmov 0.0  }
  0x3e   : > { %160 = vst.msk [vmem:[%s826_s18] sm:$0xff] %vm159_vm0, %v675_v0  ;;  %161 = vst.msk [vmem:[%s826_s18 + $0x8] sm:$0xff] %vm159_vm0, %v675_v0 }
  0x3f   : > { %162 = vst.msk [vmem:[%s826_s18 + $0x10] sm:$0xff] %vm159_vm0, %v675_v0  ;;  %163 = vst.msk [vmem:[%s826_s18 + $0x18] sm:$0xff] %vm159_vm0, %v675_v0 }
  0x40   : > { %164 = vst.msk [vmem:[%s826_s18 + $0x20] sm:$0xff] %vm159_vm0, %v675_v0 }
  0x41 PF: > { %v518_v1 = vld [vmem:[%s817_s22 + $0x10] ss:$0 sps:$4 sm:$0xff]   ;;  %v676_v2 = vmov 0.0   ;;  %vm677_vm1 = vmmov 0   ;;  %v519_v3 = vld [vmem:[%s817_s22 + $0x8] sm:$0xff]   ;;  %v520_v4 = vld [vmem:[%s817_s22] sm:$0xff]  }
  0x42   : > { %380 = vmatprep.subr.bf16.mxu0 %v676_v2  ;;  %398 = vmatprep.subr.bf16.mxu1 %v676_v2  ;;  %vm252_vm2 = vcmask 326656   ;;  %s407_s12 = smul.u32 640, %s657_s13  ;;  %s272_s25 = sshll.u32 %s826_s18, 4  ;;  %s857_s25 = int_to_ptr.vmem [resolvable:$true] %s272_s25 }
  0x43   : > { %381 = vmatpush3.bf16.xpose.msra.mxu0 %v518_v1  ;;  %401 = vmatpush3.bf16.xpose.msra.mxu1 %v518_v1  ;;  %s863_s13 = scalar_lea.sflag [#allocation4], %s149_s28  ;;  %s549_s21 = scalar_lea.vmem %s857_s25, 640 }
  0x44   : > { %382 = vmatprep.subr.bf16.mxu0 %v676_v2  ;;  %399 = vmatprep.subr.bf16.mxu1 %v676_v2  ;;  %s855_s24 = scalar_lea.hbm %s924_s1, %s407_s12  ;;  %p550_p7 = scmp.ne.s32.totalorder %s857_s25, %s549_s21 }
  0x45   : > { %386 = vmatprep.mubr.msk.bf16.mxu0 %vm677_vm1, %v676_v2  ;;  %390 = vmatprep.mubr.msk.bf16.mxu1 %vm677_vm1, %v676_v2  ;;  %v242_v5 = vld [vmem:[%s826_s18] sm:$0xff]  ;;  %v243_v13 = vld [vmem:[%s826_s18 + $0x8] sm:$0xff]  ;;  %s678_s5 = smov [#allocation5]  }
  0x46   : > { %v244_v6 = vld [vmem:[%s826_s18 + $0x10] sm:$0xff]  ;;  %v245_v14 = vld [vmem:[%s826_s18 + $0x18] sm:$0xff]  ;;  %p551_p4 = pnand %p550_p7, %p784_p12  ;;  %s553_s17 = sshll.u32 %s678_s5, 4  ;;  %s554_s17 = int_to_ptr.vmem [resolvable:$false] %s553_s17 }
  0x47   : > { %v246_v21 = vld [vmem:[%s826_s18 + $0x20] sm:$0xff]  ;;  %s555_s26 = scalar_lea.vmem %s554_s17, 1280  ;;  %p556_p9 = scmp.lt.s32.totalorder %s857_s25, %s554_s17 }
  0x48   : > { %p552_p8 = pneg %p551_p4  ;;  %p557_p10 = scmp.lt.s32.totalorder %s555_s26, %s549_s21 }
  0x4a   : > { %p558_p5 = por %p557_p10, %p556_p9 }
  0x4b   : > { %383 = vmatpush3.bf16.xpose.msra.mxu0 %v519_v3  ;;  %402 = vmatpush3.bf16.xpose.msra.mxu1 %v519_v3 }
  0x4c   : > { %384 = vmatprep.subr.bf16.mxu0 %v676_v2  ;;  %400 = vmatprep.subr.bf16.mxu1 %v676_v2  ;;  %p559_p11 = pnand %p558_p5, %p552_p8 }
  0x53   : > { %385 = vmatpush3.bf16.xpose.msra.mxu0 %v520_v4  ;;  %403 = vmatpush3.bf16.xpose.msra.mxu1 %v520_v4 }
  0x5a   : > { %387 = vmatmul.mubr.bf16.vlgmr.msra.gmra.mxu0 %v520_v4  ;;  %391 = vmatmul.mubr.bf16.vlgmr.msra.gmra.mxu1 %v519_v3 }
  0x5b   : > { %394 = vmatprep.mubr.msk.bf16.mxu1 %vm677_vm1, %v676_v2 }
  0x62   : > { %395 = vmatmul.mubr.bf16.gmra.mxu1 %v518_v1 }
 0x11a   : > { %v220_v7 = vpop.f32.mrf.mxu0  ;;  %v228_v8 = vpop.f32.mrf.mxu1 }
 0x11b   : > { %v247_v9 = vadd.f32 %v242_v5, %v220_v7  ;;  %v249_v10 = vadd.f32 %v244_v6, %v228_v8 }
 0x11c   : > { %v388_v11 = vpop.f32.mrf.mxu0  ;;  %v392_v12 = vpop.f32.mrf.mxu1 }
 0x11d   : > { %253 = vst.msk [vmem:[%s826_s18] sm:$0xff] %vm252_vm2, %v247_v9  ;;  %255 = vst.msk [vmem:[%s826_s18 + $0x10] sm:$0xff] %vm252_vm2, %v249_v10 }
 0x11e   : > { %v223_v15 = vpop.f32.mrf.mxu0  ;;  %v231_v16 = vpop.f32.mrf.mxu1 }
 0x11f   : > { %v248_v17 = vadd.f32 %v243_v13, %v223_v15  ;;  %v250_v18 = vadd.f32 %v245_v14, %v231_v16 }
 0x120   : > { %v389_v19 = vpop.f32.mrf.mxu0  ;;  %v393_v20 = vpop.f32.mrf.mxu1 }
 0x121   : > { %254 = vst.msk [vmem:[%s826_s18 + $0x8] sm:$0xff] %vm252_vm2, %v248_v17  ;;  %256 = vst.msk [vmem:[%s826_s18 + $0x18] sm:$0xff] %vm252_vm2, %v250_v18 }
 0x122   : > { %v236_v22 = vpop.f32.mrf.mxu1 }
 0x123   : > { %v251_v23 = vadd.f32 %v246_v21, %v236_v22 }
 0x124   : > { %v396_v24 = vpop.f32.mrf.mxu1 }
 0x125   : > { %257 = vst.msk [vmem:[%s826_s18 + $0x20] sm:$0xff] %vm252_vm2, %v251_v23 }
 0x126   : > { %v239_v25 = vpop.f32.mrf.mxu1 }
 0x127   : > { %562 = shalt.err (!%p559_p11)
}
 0x128   : > { %s563_s29 = scalar_lea.hbm %s855_s24, 640  ;;  %s567_s28 = scalar_lea.hbm %s924_s1, 1280 }
 0x129   : > { %p564_p13 = scmp.ne.s32.totalorder %s855_s24, %s563_s29  ;;  %p568_p6 = scmp.lt.s32.totalorder %s855_s24, %s924_s1 }
 0x12a   : > { %p569_p3 = scmp.lt.s32.totalorder %s567_s28, %s563_s29 }
 0x12b   : > { %p565_p0 = pnand %p564_p13, %p784_p12 }
 0x12c   : > { %p570_p7 = por %p569_p3, %p568_p6 }
 0x12d   : > { %p566_p1 = pneg %p565_p0 }
 0x12f   : > { %p571_p4 = pnand %p570_p7, %p566_p1 }
 0x131   : > { %574 = shalt.err (!%p571_p4)
}
 0x132   : > { %s679_s12 = smov 128   ;;  %s680_s30 = smov 8   ;;  %v397_v26 = vpop.f32.mrf.mxu1 }
 0x133   : > { %410 = dma.vmem_to_hbm [thread:$0]  (%p784_p12), %s857_s25, 640, %s855_s24, %s863_s13, %s679_s12, %s679_s12, %s680_s30  }
 0x134 PF: > { %p421_p8 = scmp.ge.s32.totalorder %s669_s16, 2  ;;  %s287_s27 = sand.u32 1, %s629_s6  }
 0x135   : > { %s288_s21 = scalar_lea.sflag [#allocation4], %s287_s27 }
 0x136   : > { %p417_p9 = pnand %p421_p8, %p794_p2 }
 0x138   : > { %p418_p10 = pneg %p417_p9 }
 0x13a   : > { %624 = dma.done.wait (%p418_p10), %s288_s21, 640  }
 0x13b   : > { %626 = vsyncadd (%p418_p10), %s288_s21, 4294966656  ;;  %s17_s16 = sadd.s32 1, %s669_s16   ;;  %s932_s4 = sld [smem:[#allocation8_spill]] }
 0x13c   : > { %p14_p5 = scmp.ge.s32.totalorder %s17_s16, 6   ;;  %s933_s6 = smov %s633_s7 }
 0x13d   : > { %s934_s7 = smov %s637_s8  ;;  %s935_s8 = smov %s779_s2 }
 0x13e   : > { %s936_s9 = smov %s645_s10  ;;  %s937_s10 = smov %s649_s11 }
 0x13f   : > { %s938_s11 = smov %s782_s3  ;;  %s939_s12 = smov %s661_s14 }
 0x140   : > { %s940_s13 = smov %s665_s15  ;;  %s941_s14 = smov %s944_s19 }
 0x141   : > { %s942_s15 = smov %s932_s4  ;;  %16 = sbr.rel (!%p14_p5) target bundleno = 9 (0x9), region = 73 }
 0x146   :  { %293 = vsyncpa [#allocation3], 1 }
 0x147   :  { %295 = vsyncpa [#allocation3 + $0x1], 1 }
 0x148   :  { %296 = vsyncpa [#allocation4], 1 }
 0x149   :  { %298 = vsyncpa [#allocation4 + $0x1], 1 }

</bundles_post_ra>
